<compile_context>
chip_gen: v7x
topology: tpu7x:2x2x1
jax: 0.10.0
libtpu: 0.0.40
codegen_flags: <defaults>
</compile_context>

<pallas_src>
import functools

import jax
import jax.numpy as jnp
from jax import lax
from jax.experimental import pallas as pl
from jax.experimental.pallas import tpu as pltpu


# --------------------------------------------------------------------------- #
# Pallas kernel: grid step (m, kb) computes q[m] @ queue[1-m][kb-block].T       #
# --------------------------------------------------------------------------- #
def _neg_kernel(q_ref, queue_ref, neg_ref, *, inv_t):
    # q_ref:     (1, R_p, n_dim)   queue_ref: (1, block_k, n_dim)
    # Contract over the feature dim of both operands (no transpose materialized).
    neg = lax.dot_general(
        q_ref[0], queue_ref[0],
        dimension_numbers=(((1,), (1,)), ((), ())),
        preferred_element_type=jnp.float32,
    )
    neg_ref[0] = neg * inv_t


def _vmem_budget_bytes():
    """Generation-aware VMEM budget (leaves headroom; safe fallback = v7x 64 MiB)."""
    cap = 64 << 20
    try:
        cap = int(pltpu.get_tpu_info().vmem_capacity_bytes)
    except Exception:
        pass
    return max(16 << 20, min((cap * 3) // 4, 96 << 20))


def _pick_block_k(K, n_dim, q_itemsize, out_itemsize, rows_p, vmem_budget,
                  target_bytes=8 << 20):
    """block_k sized against both the ~8 MiB queue-tile target and the VMEM budget
    (double-buffered queue tile + double-buffered f32 output tile + resident q)."""
    if K <= 128:
        return K
    per_row = 2 * (n_dim * q_itemsize + rows_p * out_itemsize)     # per block_k row
    fixed = 2 * rows_p * n_dim * q_itemsize + (2 << 20)            # resident q + slack
    bk_budget = max(128, (vmem_budget - fixed) // per_row)
    bk_target = max(128, target_bytes // max(1, n_dim * q_itemsize))
    bk = int(min(bk_budget, bk_target))
    bk = max(128, (bk // 128) * 128)
    if bk >= K:
        return K                    # single full-width block; fits the budget
    # Prefer a divisor of K (no masked remainder tile) if one is close enough;
    # otherwise keep bk and use a cdiv grid with a masked last tile.
    if K % 128 == 0:
        d = bk
        while d >= 128 and K % d:
            d -= 128
        if d >= max(128, bk // 2):
            bk = d
    return bk


def _fused_neg_logits(q_stack, memory, inv_t, block_k=None):
    """neg[m] = (q_stack[m] @ memory[1-m].T) * inv_t for m in {0,1}, f32.

    memory is the stacked (2, K, n_dim) CMC queue; modality m scores against the
    *other* modality's queue (CMC pairing).
    """
    two, R, n_dim = q_stack.shape
    assert two == 2 and memory.shape[0] == 2 and memory.shape[2] == n_dim
    K = memory.shape[1]
    q_itemsize = jnp.dtype(memory.dtype).itemsize

    # Pad LHS rows to a multiple of 16 (full packed bf16 sublane groups).
    R_p = max(16, ((R + 15) // 16) * 16)
    q_p = q_stack.astype(memory.dtype)
    if R_p != R:
        q_p = jnp.pad(q_p, ((0, 0), (0, R_p - R), (0, 0)))

    budget = _vmem_budget_bytes()
    if block_k is None:
        block_k = _pick_block_k(K, n_dim, q_itemsize, 4, R_p, budget)
    nk = pl.cdiv(K, block_k)

    neg = pl.pallas_call(
        functools.partial(_neg_kernel, inv_t=float(inv_t)),
        out_shape=jax.ShapeDtypeStruct((2, R_p, K), jnp.float32),
        grid_spec=pltpu.PrefetchScalarGridSpec(
            num_scalar_prefetch=0,
            grid=(2, nk),
            in_specs=[
                # queries for modality m (resident across kb)
                pl.BlockSpec((1, R_p, n_dim), lambda m, kb: (m, 0, 0)),
                # CMC pairing: modality m streams the OTHER modality's queue
                pl.BlockSpec((1, block_k, n_dim), lambda m, kb: (1 - m, kb, 0)),
            ],
            out_specs=pl.BlockSpec((1, R_p, block_k), lambda m, kb: (m, 0, kb)),
        ),
        compiler_params=pltpu.CompilerParams(
            dimension_semantics=("parallel", "parallel"),
            vmem_limit_bytes=budget,
        ),
    )(q_p, memory)
    return neg[:, :R] if R_p != R else neg


@functools.partial(jax.jit, static_argnums=(3,))
def _cmc_forward_logits(q_stack, memory, k_stack, inv_t):
    """Fused CMC logits: f32 pos + Pallas-tiled neg against the opposite queue."""
    neg = _fused_neg_logits(q_stack, memory, inv_t)                    # (2, R, K) f32
    pos = jnp.sum(q_stack.astype(jnp.float32) * k_stack.astype(jnp.float32),
                  axis=-1, keepdims=True) * inv_t                      # (2, R, 1)
    # TODO(synk): this concat is one extra pass over the (R, K) logits kept only to
    # reproduce torch.cat's (bsz, 1+K) layout; return pos/neg separately if the loss
    # can consume them directly.
    return jnp.concatenate([pos, neg], axis=2)                         # (2, R, 1+K)


@functools.partial(jax.jit, donate_argnums=(0,))
def _enqueue(memory, k1, k2, index):
    """In-place (donated) enqueue of k1/k2 at rows (index + i) % K of both queues."""
    K = memory.shape[1]
    num = k1.shape[0]
    rows = (index + jnp.arange(num, dtype=jnp.int32)) % K
    memory = memory.at[0, rows, :].set(lax.stop_gradient(k1).astype(memory.dtype))
    memory = memory.at[1, rows, :].set(lax.stop_gradient(k2).astype(memory.dtype))
    return memory


# --------------------------------------------------------------------------- #
# CMCMoCo module (JAX/Pallas port)                                             #
# --------------------------------------------------------------------------- #
class CMCMoCo:
    """MoCo-style memory for two modalities (CMC)."""

    def __init__(self, n_dim, K=65536, T=0.07, seed=0, memory_dtype=jnp.bfloat16):
        self.K = K
        self.T = T
        self.n_dim = n_dim
        # TODO(synk): host-side Python int pointer; goes stale if __call__ is wrapped
        # in jax.jit (would need to become a traced device scalar).
        self.index = 0
        key = jax.random.PRNGKey(seed)
        k1, k2 = jax.random.split(key)
        m1 = jax.random.normal(k1, (K, n_dim), dtype=jnp.float32)
        m2 = jax.random.normal(k2, (K, n_dim), dtype=jnp.float32)
        # F.normalize (L2, dim=1); store bf16 to halve queue HBM traffic.
        m1 = m1 / jnp.linalg.norm(m1, axis=1, keepdims=True)
        m2 = m2 / jnp.linalg.norm(m2, axis=1, keepdims=True)
        # Single (2, K, n_dim) array so one fused pallas_call streams both queues
        # and the enqueue updates both in place.
        self.memory = jnp.stack([m1, m2], axis=0).astype(memory_dtype)

    @property
    def memory_1(self):
        return self.memory[0]

    @property
    def memory_2(self):
        return self.memory[1]

    def _update_pointer(self, bsz):
        self.index = (self.index + bsz) % self.K

    def __call__(self, q1, k1, q2, k2, q1_jig=None, q2_jig=None,
                 all_k1=None, all_k2=None):
        bsz = q1.shape[0]
        k1 = lax.stop_gradient(k1)
        k2 = lax.stop_gradient(k2)
        use_jig = (q1_jig is not None) and (q2_jig is not None)
        inv_t = 1.0 / float(self.T)

        if use_jig:
            # Stack plain + jig queries so each queue is streamed from HBM only once.
            qa = jnp.concatenate([q1, q1_jig], axis=0)   # modality-1 queries (vs queue2)
            qb = jnp.concatenate([q2, q2_jig], axis=0)   # modality-2 queries (vs queue1)
            ka = jnp.concatenate([k2, k2], axis=0)
            kb = jnp.concatenate([k1, k1], axis=0)
        else:
            qa, qb, ka, kb = q1, q2, k2, k1

        q_stack = jnp.stack([qa, qb], axis=0)            # (2, R, n_dim)
        k_stack = jnp.stack([ka, kb], axis=0)            # (2, R, n_dim)

        out = _cmc_forward_logits(q_stack, self.memory, k_stack, inv_t)  # (2, R, 1+K)

        if use_jig:
            logits1 = jnp.squeeze(out[0, :bsz])
            logits1_jig = jnp.squeeze(out[0, bsz:])
            logits2 = jnp.squeeze(out[1, :bsz])
            logits2_jig = jnp.squeeze(out[1, bsz:])
        else:
            logits1 = jnp.squeeze(out[0])
            logits2 = jnp.squeeze(out[1])

        labels = jnp.zeros((bsz,), dtype=jnp.int32)

        all_k1 = all_k1 if all_k1 is not None else k1
        all_k2 = all_k2 if all_k2 is not None else k2
        assert all_k1.shape[0] == all_k2.shape[0]
        # Donated, in-place enqueue (no full-queue copy per step).
        self.memory = _enqueue(self.memory, all_k1, all_k2, jnp.int32(self.index))
        self._update_pointer(all_k1.shape[0])

        if use_jig:
            return logits1, logits2, logits1_jig, logits2_jig, labels
        return logits1, logits2, labels


# --------------------------------------------------------------------------- #
# Reference + self-test                                                        #
# --------------------------------------------------------------------------- #
def _ref_logits(q, k, queue, T):
    """Plain-JAX reference; mirrors the kernel's bf16-queue / bf16-q matmul path."""
    qf = q.astype(queue.dtype).astype(jnp.float32)
    queuef = queue.astype(jnp.float32)
    pos = jnp.sum(q.astype(jnp.float32) * k.astype(jnp.float32),
                  axis=-1, keepdims=True)
    neg = qf @ queuef.T
    return jnp.squeeze(jnp.concatenate([pos, neg], axis=1) / T)


if __name__ == "__main__":
    bsz, n_dim, K, T = 2, 32, 256, 0.07

    key = jax.random.PRNGKey(0)
    kq1, kk1, kq2, kk2, kj1, kj2 = jax.random.split(key, 6)

    def _norm(x):
        return x / jnp.linalg.norm(x, axis=1, keepdims=True)

    q1 = _norm(jax.random.normal(kq1, (bsz, n_dim), dtype=jnp.float32))
    k1 = _norm(jax.random.normal(kk1, (bsz, n_dim), dtype=jnp.float32))
    q2 = _norm(jax.random.normal(kq2, (bsz, n_dim), dtype=jnp.float32))
    k2 = _norm(jax.random.normal(kk2, (bsz, n_dim), dtype=jnp.float32))
    q1_jig = _norm(jax.random.normal(kj1, (bsz, n_dim), dtype=jnp.float32))
    q2_jig = _norm(jax.random.normal(kj2, (bsz, n_dim), dtype=jnp.float32))

    model = CMCMoCo(n_dim=n_dim, K=K, T=T, seed=0)

    # --- call 1: plain path ---------------------------------------------- #
    # (properties return fresh sliced arrays, so they survive buffer donation)
    queue1_before = model.memory_1
    queue2_before = model.memory_2
    logits1, logits2, labels = model(q1, k1, q2, k2)
    jax.block_until_ready((logits1, logits2, labels, model.memory))

    ref1 = _ref_logits(q1, k2, queue2_before, T)
    ref2 = _ref_logits(q2, k1, queue1_before, T)
    assert logits1.shape == (bsz, 1 + K) and logits2.shape == (bsz, 1 + K)
    assert jnp.allclose(logits1, ref1, atol=1e-3, rtol=1e-3)
    assert jnp.allclose(logits2, ref2, atol=1e-3, rtol=1e-3)
    assert jnp.array_equal(model.memory_1[:bsz], k1.astype(model.memory.dtype))
    assert jnp.array_equal(model.memory_2[:bsz], k2.astype(model.memory.dtype))
    assert model.index == bsz
    assert labels.shape == (bsz,) and int(jnp.sum(labels)) == 0

    # --- call 2: jig path (fused queue pass) ------------------------------ #
    queue1_before = model.memory_1
    queue2_before = model.memory_2
    l1, l2, l1j, l2j, labels2 = model(q1, k1, q2, k2, q1_jig=q1_jig, q2_jig=q2_jig)
    jax.block_until_ready((l1, l2, l1j, l2j, labels2, model.memory))

    assert jnp.allclose(l1, _ref_logits(q1, k2, queue2_before, T), atol=1e-3, rtol=1e-3)
    assert jnp.allclose(l2, _ref_logits(q2, k1, queue1_before, T), atol=1e-3, rtol=1e-3)
    assert jnp.allclose(l1j, _ref_logits(q1_jig, k2, queue2_before, T), atol=1e-3, rtol=1e-3)
    assert jnp.allclose(l2j, _ref_logits(q2_jig, k1, queue1_before, T), atol=1e-3, rtol=1e-3)
    assert model.index == 2 * bsz

    print("KERNEL_OK")
</pallas_src>

<mosaic_0001>
module attributes {stable_mosaic.version = 11 : i64} {
  func.func @_neg_kernel(%arg0: i32, %arg1: i32, %arg2: memref<1x16x32xbf16, #tpu.memory_space<vmem>>, %arg3: memref<1x256x32xbf16, #tpu.memory_space<vmem>>, %arg4: memref<1x16x256xf32, #tpu.memory_space<vmem>>) attributes {dimension_semantics = [#tpu.dimension_semantics<parallel>, #tpu.dimension_semantics<parallel>], iteration_bounds = array<i64: 2, 1>, scalar_prefetch = 0 : i64, scratch_operands = 0 : i64, tpu.core_type = #tpu.core_type<tc>, window_params = [{transform_indices = @transform_0, window_bounds = array<i64: 1, 16, 32>}, {transform_indices = @transform_1, window_bounds = array<i64: 1, 256, 32>}, {transform_indices = @transform_2, window_bounds = array<i64: 1, 16, 256>}]} {
    %c0 = arith.constant 0 : index
    %c0_0 = arith.constant 0 : index
    %c0_1 = arith.constant 0 : index
    %0 = vector.load %arg2[%c0, %c0_0, %c0_1] : memref<1x16x32xbf16, #tpu.memory_space<vmem>>, vector<1x16x32xbf16>
    %1 = vector.shape_cast %0 : vector<1x16x32xbf16> to vector<16x32xbf16>
    %c0_2 = arith.constant 0 : index
    %c0_3 = arith.constant 0 : index
    %c0_4 = arith.constant 0 : index
    %2 = vector.load %arg3[%c0_2, %c0_3, %c0_4] : memref<1x256x32xbf16, #tpu.memory_space<vmem>>, vector<1x256x32xbf16>
    %3 = vector.shape_cast %2 : vector<1x256x32xbf16> to vector<256x32xbf16>
    %cst = arith.constant dense<0.000000e+00> : vector<16x256xf32>
    %4 = tpu.matmul %1, %3, %cst {dimension_numbers = #tpu.dot_dimension_numbers<[1], [1], [0], [0], [0, 0, 1, 0], [], []>} : vector<16x32xbf16>, vector<256x32xbf16>, vector<16x256xf32> -> vector<16x256xf32>
    %cst_5 = arith.constant 14.2857141 : f32
    %5 = vector.broadcast %cst_5 : f32 to vector<16x256xf32>
    %6 = arith.mulf %4, %5 : vector<16x256xf32>
    %c0_6 = arith.constant 0 : index
    %c0_7 = arith.constant 0 : index
    %c0_8 = arith.constant 0 : index
    %7 = vector.load %arg4[%c0_6, %c0_7, %c0_8] : memref<1x16x256xf32, #tpu.memory_space<vmem>>, vector<1x16x256xf32>
    %8 = vector.shape_cast %7 : vector<1x16x256xf32> to vector<16x256xf32>
    %9 = vector.shape_cast %6 : vector<16x256xf32> to vector<1x16x256xf32>
    tpu.vector_store %arg4[%c0_6, %c0_7, %c0_8], %9 {strides = array<i32>} : memref<1x16x256xf32, #tpu.memory_space<vmem>>, vector<1x16x256xf32>,
    return
  }
  func.func @transform_0(%arg0: i32, %arg1: i32) -> (i32, i32, i32) {
    %c0_i32 = arith.constant 0 : i32
    %c0_i32_0 = arith.constant 0 : i32
    %c0_i32_1 = arith.constant 0 : i32
    return %arg0, %c0_i32, %c0_i32_0 : i32, i32, i32
  }
  func.func @transform_1(%arg0: i32, %arg1: i32) -> (i32, i32, i32) {
    %c1_i32 = arith.constant 1 : i32
    %0 = arith.subi %c1_i32, %arg0 : i32
    %c0_i32 = arith.constant 0 : i32
    %c0_i32_0 = arith.constant 0 : i32
    return %0, %arg1, %c0_i32 : i32, i32, i32
  }
  func.func @transform_2(%arg0: i32, %arg1: i32) -> (i32, i32, i32) {
    %c0_i32 = arith.constant 0 : i32
    %c0_i32_0 = arith.constant 0 : i32
    return %arg0, %c0_i32, %arg1 : i32, i32, i32
  }
}

</mosaic_0001>

<bundles_post_ra>
// kernel: _cmc_forward_logits.1
= control target key start
LH: loop header
LB: loop body
LE: loop exit
PB: predicated region body
PF: predicated region fallthrough
CT: control target
= control target key end

     0   :  { %s672_s9 = smov 0   ;;  %s674_s10 = smov 0   ;;  %s748_s0 = inlined_call_operand.vmem [shape: bf16[2,16,32], index: 0, kind: input, shape index: {}]   ;;  %s749_s1 = inlined_call_operand.vmem [shape: bf16[2,256,32], index: 1, kind: input, shape index: {}]   ;;  %s750_s2 = inlined_call_operand.vmem [shape: f32[2,16,256], index: 2, kind: output, shape index: {}]  }
   0x1   :  { %s676_s11 = smov 0  }
   0x2 LB: > { %s24_s12 = sadd.s32 1, %s651_s10  ;;  %p536_p0 = scmp.ge.s32.totalorder %s655_s11, 1  ;;  %s655_s11 = sphi %s676_s11, %s12_s11   ;;  %s651_s10 = sphi %s674_s10, %s752_s10   ;;  %s647_s9 = sphi %s672_s9, %s751_s9  }
   0x3   : > { %p26_p1 = scmp.ge.s32.totalorder %s24_s12, 2  ;;  %p147_p2 = scmp.lt.s32.totalorder %s655_s11, 3 }
   0x5   : > { %s754_s12 = smov (%p26_p1, %s24_s12), 0  ;;  %p148_p3 = pnand %p536_p0, %p147_p2 }
   0x6   : > { %s188_s13 = ssub.s32 (!%p148_p3), 1, %s647_s9  ;;  %p183_p4 = scmp.lt.s32.totalorder (!%p148_p3), %s647_s9, 1  ;;  %vm330_vm0 = vcmask (!%p148_p3), 261120  }
   0x7   : > { %151 = sbr.rel (%p148_p3) target bundleno = 302 (0x12e), region = 28  ;;  %p190_p5 = scmp.lt.s32.totalorder (!%p148_p3), %s188_s13, 1 }
   0xe   : > { %s756_s9 = smov (!%p183_p4, %s647_s9), 1  ;;  %s758_s13 = smov (!%p190_p5, %s188_s13), 1 }
   0xf   : > { %s563_s14 = sshll.u32 %s756_s9, 3  ;;  %s564_s15 = sshll.u32 %s758_s13, 7 }
  0x10   : > { %s187_s18 = scalar_lea.vmem %s748_s0, %s563_s14  ;;  %s699_s21 = scalar_lea.vmem %s749_s1, %s564_s15 }
  0x11   : > { %v632_v0 = vld [vmem:[%s187_s18] sm:$0xff]   ;;  %v618_v3 = vld [vmem:[%s699_s21 + $0x48] sm:$0xff]   ;;  %v620_v7 = vld [vmem:[%s699_s21 + $0x50] sm:$0xff]   ;;  %s565_s22 = sshll.u32 %s756_s9, 5 }
  0x12   : > { %v616_v1 = vld [vmem:[%s699_s21 + $0x40] sm:$0xff]   ;;  %582 = vmatprep.mubr.msk.bf16.mxu0 %vm330_vm0, %v632_v0  ;;  %v619_v5 = vld [vmem:[%s699_s21 + $0x8] sm:$0xff]   ;;  %v621_v8 = vld [vmem:[%s699_s21 + $0x10] sm:$0xff]   ;;  %s208_s25 = scalar_lea.vmem %s750_s2, %s565_s22 }
  0x13   : > { %v617_v2 = vld [vmem:[%s699_s21] sm:$0xff]   ;;  %584 = vmatprep.subr.msk.bf16.mxu0 %vm330_vm0, %v616_v1  ;;  %v338_v6 = vsel %vm330_vm0, %v619_v5, 0  ;;  %v341_v9 = vsel %vm330_vm0, %v621_v8, 0  ;;  %v622_v10 = vld [vmem:[%s699_s21 + $0x58] sm:$0xff]   ;;  %v626_v16 = vld [vmem:[%s699_s21 + $0x68] sm:$0xff]  }
  0x14   : > { %v335_v4 = vsel %vm330_vm0, %v617_v2, 0  ;;  %v623_v11 = vld [vmem:[%s699_s21 + $0x18] sm:$0xff]   ;;  %v624_v13 = vld [vmem:[%s699_s21 + $0x60] sm:$0xff]   ;;  %v627_v17 = vld [vmem:[%s699_s21 + $0x28] sm:$0xff]  }
  0x15   : > { %567 = vmatpush3.bf16.xpose.msra.mxu0 %v335_v4  ;;  %v344_v12 = vsel %vm330_vm0, %v623_v11, 0  ;;  %v625_v14 = vld [vmem:[%s699_s21 + $0x20] sm:$0xff]   ;;  %v350_v18 = vsel %vm330_vm0, %v627_v17, 0  ;;  %v628_v19 = vld [vmem:[%s699_s21 + $0x70] sm:$0xff]   ;;  %v630_v22 = vld [vmem:[%s699_s21 + $0x78] sm:$0xff]  }
  0x16   : > { %585 = vmatprep.subr.msk.bf16.mxu0 %vm330_vm0, %v618_v3  ;;  %v347_v15 = vsel %vm330_vm0, %v625_v14, 0  ;;  %v629_v20 = vld [vmem:[%s699_s21 + $0x30] sm:$0xff]   ;;  %v631_v23 = vld [vmem:[%s699_s21 + $0x38] sm:$0xff]  }
  0x17   : > { %v353_v21 = vsel %vm330_vm0, %v629_v20, 0  ;;  %v356_v24 = vsel %vm330_vm0, %v631_v23, 0 }
  0x1d   : > { %569 = vmatpush3.bf16.xpose.msra.mxu0 %v338_v6 }
  0x1e   : > { %586 = vmatprep.subr.msk.bf16.mxu0 %vm330_vm0, %v620_v7 }
  0x25   : > { %571 = vmatpush3.bf16.xpose.msra.mxu0 %v341_v9 }
  0x26   : > { %587 = vmatprep.subr.msk.bf16.mxu0 %vm330_vm0, %v622_v10 }
  0x2d   : > { %573 = vmatpush3.bf16.xpose.msra.mxu0 %v344_v12 }
  0x2e   : > { %588 = vmatprep.subr.msk.bf16.mxu0 %vm330_vm0, %v624_v13 }
  0x35   : > { %575 = vmatpush3.bf16.xpose.msra.mxu0 %v347_v15 }
  0x36   : > { %589 = vmatprep.subr.msk.bf16.mxu0 %vm330_vm0, %v626_v16 }
  0x3d   : > { %577 = vmatpush3.bf16.xpose.msra.mxu0 %v350_v18 }
  0x3e   : > { %590 = vmatprep.subr.msk.bf16.mxu0 %vm330_vm0, %v628_v19 }
  0x45   : > { %579 = vmatpush3.bf16.xpose.msra.mxu0 %v353_v21 }
  0x46   : > { %591 = vmatprep.subr.msk.bf16.mxu0 %vm330_vm0, %v630_v22 }
  0x4d   : > { %581 = vmatpush3.bf16.xpose.msra.mxu0 %v356_v24 }
  0x54   : > { %583 = vmatmul.mubr.msk.bf16.vlgmr.msra.gmra.mrb[0].mxu0 %vm330_vm0, %v632_v0 }
 0x127   : > { %v416_v25 = vpop.f32.mrb[0].mxu0 }
 0x128   : > { %v425_v26 = vmul.f32 14.285714, %v416_v25  ;;  %v418_v27 = vpop.f32.mrb[1].mxu0 }
 0x129   : > { %v426_v28 = vmul.f32 14.285714, %v418_v27  ;;  %v420_v29 = vpop.f32.mrb[2].mxu0 }
 0x12a   : > { %429 = vst [vmem:[%s208_s25] sm:$0xff] %v425_v26  ;;  %v427_v30 = vmul.f32 14.285714, %v420_v29  ;;  %v422_v31 = vpop.f32.mrb[3].mxu0 }
 0x12b   : > { %430 = vst [vmem:[%s208_s25 + $0x8] sm:$0xff] %v426_v28  ;;  %v428_v32 = vmul.f32 14.285714, %v422_v31 }
 0x12c   : > { %431 = vst [vmem:[%s208_s25 + $0x10] sm:$0xff] %v427_v30 }
 0x12d   : > { %432 = vst [vmem:[%s208_s25 + $0x18] sm:$0xff] %v428_v32 }
 0x12e PF: > { %s12_s11 = sadd.s32 1, %s655_s11   ;;  %s751_s9 = smov %s651_s10 }
 0x12f   : > { %p9_p6 = scmp.ge.s32.totalorder %s12_s11, 4   ;;  %s752_s10 = smov %s754_s12 }
 0x131   :  { %11 = sbr.rel (!%p9_p6) target bundleno = 2 (0x2), region = 61 }

</bundles_post_ra>
